<compile_context>
chip_gen: v5e
topology: v5e:2x2
jax: 0.10.0
libtpu: 0.0.40
codegen_flags: <defaults>
</compile_context>

<pallas_src>
import functools

import jax
import jax.numpy as jnp
from jax.experimental import pallas as pl
from jax.experimental.pallas import tpu as pltpu


def _round_up(x, m):
    return ((x + m - 1) // m) * m


# Keep total resident VMEM under this on every generation (v7x: 64 MiB physical).
_VMEM_BUDGET = 40 * 1024 * 1024


def attn_partial_kernel(x_ref, wvu_ref, bvu_ref, ww_ref, bw_ref,
                        m_ref, l_ref, acc_ref, *,
                        n_valid, tile_n, tiles_per_split, d_pad, mask_needed):
    """One (split c, tile i) step of the online softmax over the instance axis.

    Outputs (per split, resident in VMEM across the reduction axis i):
      m_ref  [K, 1]  running max of the logits
      l_ref  [K, 1]  running sum of exp(logit - m)
      acc_ref[K, L]  un-normalized afeat accumulator sum(exp(logit - m) * x)
    """
    i = pl.program_id(1)

    @pl.when(i == 0)
    def _init():
        m_ref[...] = jnp.full_like(m_ref, -1e30)
        l_ref[...] = jnp.zeros_like(l_ref)
        acc_ref[...] = jnp.zeros_like(acc_ref)

    x = x_ref[...]                                                       # [TN, L]

    # Fused attention_V | attention_U projection: one MXU matmul, lane-aligned split.
    vu = jnp.dot(x, wvu_ref[...], preferred_element_type=jnp.float32)
    vu = vu + bvu_ref[...].astype(jnp.float32)                           # [TN, 2*Dp]
    gate = jnp.tanh(vu[:, :d_pad]) * jax.nn.sigmoid(vu[:, d_pad:])       # [TN, Dp] f32
    # (pad columns: tanh(0)*sigmoid(0) == 0, and Ww pad rows are 0 -> exact.)

    s = jnp.dot(gate.astype(ww_ref.dtype), ww_ref[...],
                preferred_element_type=jnp.float32)
    s = s + bw_ref[...].astype(jnp.float32)                              # [TN, K]
    s_t = s.T                                                            # [K, TN]

    # Online softmax statistics. The max may include padded-row logits; that is
    # numerically harmless (common offset), correctness comes from masking p.
    m_prev = m_ref[...]                                                  # [K, 1]
    m_new = jnp.maximum(m_prev, jnp.max(s_t, axis=1, keepdims=True))
    alpha = jnp.exp(m_prev - m_new)                                      # [K, 1]
    p = jnp.exp(s_t - m_new)                                             # [K, TN] f32
    m_ref[...] = m_new

    def accumulate(p_blk):
        l_ref[...] = alpha * l_ref[...] + jnp.sum(p_blk, axis=1, keepdims=True)
        # bf16 p @ bf16 x with f32 accumulation (standard flash-attention tradeoff).
        acc_ref[...] = alpha * acc_ref[...] + jnp.dot(
            p_blk.astype(x.dtype), x, preferred_element_type=jnp.float32)

    if mask_needed:
        tile_start = (pl.program_id(0) * tiles_per_split + i) * tile_n

        @pl.when(tile_start + tile_n <= n_valid)   # fully valid tile: no mask work
        def _full():
            accumulate(p)

        @pl.when(tile_start + tile_n > n_valid)    # tile contains padded rows
        def _masked():
            col = jax.lax.broadcasted_iota(jnp.int32, p.shape, 1) + tile_start
            accumulate(jnp.where(col < n_valid, p, 0.0))
    else:
        accumulate(p)


def attention_with_classifier(x, params, *, tile_n=4096,
                              compute_dtype=jnp.bfloat16, num_core_splits=2):
    """x: [N, L]. params: pre-transposed ([in, out]) weights and [1, out] biases.

    compute_dtype: streaming/matmul dtype for x, the fused V|U weight and Ww
      (bf16 by default; None keeps everything f32). Softmax stats, accumulation
      and the classifier stay f32.
    num_core_splits: leading "parallel" grid axis splitting N across TensorCores
      (helps v7x megacore; harmless elsewhere). Clamped to the tile count.
    """
    N, L = x.shape
    D = params['wv'].shape[1]
    K = params['ww'].shape[1]
    Dp = _round_up(D, 128)          # lane-aligned half-width of the fused projection

    x_dt = jnp.dtype(compute_dtype) if compute_dtype is not None else jnp.dtype(x.dtype)
    x_item = x_dt.itemsize
    # Packed-sublane granularity of the streamed tile: (8,128) f32, (16,128) bf16, (32,128) 8-bit.
    sub = {4: 8, 2: 16, 1: 32}.get(x_item, 8)

    # --- VMEM budget math (review item: size tn / vmem_limit from buffers, not a blanket) ---
    weight_bytes = 2 * ((L * 2 * Dp + Dp * K) * x_item + 2 * Dp * 4 + K * 4)   # double-buffered
    out_bytes = 2 * (2 * K * 4 + K * L * 4)                                    # resident partials
    tn_cap = (_VMEM_BUDGET - weight_bytes - out_bytes) // (2 * L * x_item)     # 2 x-buffers
    tn = max(sub, min(_round_up(int(tile_n), sub),
                      _round_up(N, sub),
                      (int(tn_cap) // sub) * sub))

    num_splits = max(1, min(int(num_core_splits), pl.cdiv(N, tn)))
    tiles_per_split = pl.cdiv(N, tn * num_splits)
    n_pad = tiles_per_split * tn * num_splits

    vmem_need = 2 * tn * L * x_item + weight_bytes + out_bytes
    vmem_limit = int(min(max(vmem_need + 8 * 1024 * 1024, 24 * 1024 * 1024),
                         56 * 1024 * 1024))

    # --- Fuse + lane-align the V/U projection; zero-pad D -> Dp (exact, see kernel) ---
    wv = jnp.pad(params['wv'], ((0, 0), (0, Dp - D)))
    wu = jnp.pad(params['wu'], ((0, 0), (0, Dp - D)))
    bv = jnp.pad(params['bv'], ((0, 0), (0, Dp - D)))
    bu = jnp.pad(params['bu'], ((0, 0), (0, Dp - D)))
    wvu = jnp.concatenate([wv, wu], axis=1)                 # [L, 2*Dp]
    bvu = jnp.concatenate([bv, bu], axis=1)                 # [1, 2*Dp] (f32)
    ww = jnp.pad(params['ww'], ((0, Dp - D), (0, 0)))       # [Dp, K]

    if compute_dtype is not None:
        x = x.astype(compute_dtype)
        wvu = wvu.astype(compute_dtype)
        ww = ww.astype(compute_dtype)

    if n_pad != N:
        x = jnp.pad(x, ((0, n_pad - N), (0, 0)))

    kernel = functools.partial(
        attn_partial_kernel, n_valid=N, tile_n=tn, tiles_per_split=tiles_per_split,
        d_pad=Dp, mask_needed=(n_pad != N))

    cost = pl.CostEstimate(
        flops=2 * n_pad * L * (2 * Dp) + 2 * n_pad * Dp * K + 2 * n_pad * K * L,
        transcendentals=n_pad * (2 * Dp + 2 * K),
        bytes_accessed=n_pad * L * x_item + (wvu.size + ww.size) * x_item
        + (bvu.size + params['bw'].size) * 4
        + num_splits * (2 * K + K * L) * 4,
    )

    grid_spec = pltpu.PrefetchScalarGridSpec(
        num_scalar_prefetch=0,
        grid=(num_splits, tiles_per_split),
        in_specs=[
            pl.BlockSpec((tn, L), lambda c, i: (c * tiles_per_split + i, 0)),  # x stream
            pl.BlockSpec((L, 2 * Dp), lambda c, i: (0, 0)),  # fused V|U weight: resident
            pl.BlockSpec((1, 2 * Dp), lambda c, i: (0, 0)),  # fused V|U bias
            pl.BlockSpec((Dp, K), lambda c, i: (0, 0)),      # attention_weights
            pl.BlockSpec((1, K), lambda c, i: (0, 0)),
        ],
        out_specs=[
            pl.BlockSpec((None, K, 1), lambda c, i: (c, 0, 0)),   # m  (per split)
            pl.BlockSpec((None, K, 1), lambda c, i: (c, 0, 0)),   # l
            pl.BlockSpec((None, K, L), lambda c, i: (c, 0, 0)),   # acc
        ],
    )

    m, l, acc = pl.pallas_call(
        kernel,
        out_shape=(
            jax.ShapeDtypeStruct((num_splits, K, 1), jnp.float32),
            jax.ShapeDtypeStruct((num_splits, K, 1), jnp.float32),
            jax.ShapeDtypeStruct((num_splits, K, L), jnp.float32),
        ),
        grid_spec=grid_spec,
        compiler_params=pltpu.CompilerParams(
            dimension_semantics=("parallel", "arbitrary"),
            vmem_limit_bytes=vmem_limit,
        ),
        cost_estimate=cost,
    )(x, wvu, bvu, ww, params['bw'])

    # Tiny f32 JAX epilogue: merge per-split softmax stats, normalize, classify.
    m_g = jnp.max(m, axis=0)                         # [K, 1]
    scale = jnp.exp(m - m_g)                         # [S, K, 1] (0 for empty splits)
    l_g = jnp.sum(l * scale, axis=0)                 # [K, 1]
    acc_g = jnp.sum(acc * scale, axis=0)             # [K, L]
    afeat = acc_g / l_g                              # [K, L]
    return afeat @ params['wc'] + params['bc']       # [K, num_cls]  (droprate=0 -> Linear)


def init_params(key, L, D, K, num_cls):
    """Deterministic init mimicking nn.Linear's U(-1/sqrt(fan_in), 1/sqrt(fan_in))."""
    ks = jax.random.split(key, 8)

    def lin(kw, kb, fan_in, fan_out):
        bound = 1.0 / jnp.sqrt(fan_in)
        w = jax.random.uniform(kw, (fan_in, fan_out), jnp.float32, -bound, bound)  # [in, out]
        b = jax.random.uniform(kb, (1, fan_out), jnp.float32, -bound, bound)
        return w, b

    wv, bv = lin(ks[0], ks[1], L, D)          # attention_V
    wu, bu = lin(ks[2], ks[3], L, D)          # attention_U
    ww, bw = lin(ks[4], ks[5], D, K)          # attention_weights
    wc, bc = lin(ks[6], ks[7], L, num_cls)    # Classifier_1fc (droprate=0)
    return dict(wv=wv, bv=bv, wu=wu, bu=bu, ww=ww, bw=bw, wc=wc, bc=bc)


def reference(x, p):
    """Pure-JAX reference matching the PyTorch forward."""
    a_v = jnp.tanh(x @ p['wv'] + p['bv'])
    a_u = jax.nn.sigmoid(x @ p['wu'] + p['bu'])
    A = (a_v * a_u) @ p['ww'] + p['bw']        # [N, K]
    A = jax.nn.softmax(A.T, axis=1)            # [K, N]
    afeat = A @ x                              # [K, L]
    return afeat @ p['wc'] + p['bc']           # [K, num_cls]


if __name__ == "__main__":
    # Small but path-exercising shapes: D=32 exercises the lane-aligned (Dp=128)
    # V/U padding; N=40 with tile_n=16 and a 2-way split gives a partially
    # padded tile and a fully padded tile on the second split.
    N, L, D, K, num_cls = 40, 128, 32, 1, 2
    key = jax.random.PRNGKey(0)
    kx, kp = jax.random.split(key)
    x = jax.random.normal(kx, (N, L), jnp.float32)
    params = init_params(kp, L, D, K, num_cls)

    ref = reference(x, params)

    # Default path: bf16 streaming, VMEM-budgeted tile (covers all of N -> 1 tile).
    pred = jax.block_until_ready(attention_with_classifier(x, params))
    assert pred.shape == (K, num_cls)
    assert jnp.allclose(pred, ref, atol=3e-2, rtol=1e-1), (pred, ref)

    # Small tiles + explicit 2-way core split: multi-step online softmax,
    # masked last tile, and one fully padded tile on split 1.
    pred_split = jax.block_until_ready(
        attention_with_classifier(x, params, tile_n=16, num_core_splits=2))
    assert jnp.allclose(pred_split, ref, atol=3e-2, rtol=1e-1), (pred_split, ref)

    # f32 streaming path (tighter tolerance).
    pred_f32 = jax.block_until_ready(
        attention_with_classifier(x, params, tile_n=16, compute_dtype=None,
                                  num_core_splits=2))
    assert jnp.allclose(pred_f32, ref, atol=5e-3, rtol=2e-2), (pred_f32, ref)

    print("KERNEL_OK")
</pallas_src>

<mosaic_0001>
module attributes {stable_mosaic.version = 11 : i64} {
  func.func @attn_partial_kernel(%arg0: i32, %arg1: i32, %arg2: memref<48x128xbf16, #tpu.memory_space<vmem>>, %arg3: memref<128x256xbf16, #tpu.memory_space<vmem>>, %arg4: memref<1x256xf32, #tpu.memory_space<vmem>>, %arg5: memref<128x1xbf16, #tpu.memory_space<vmem>>, %arg6: memref<1x1xf32, #tpu.memory_space<vmem>>, %arg7: memref<1x1x1xf32, #tpu.memory_space<vmem>>, %arg8: memref<1x1x1xf32, #tpu.memory_space<vmem>>, %arg9: memref<1x1x128xf32, #tpu.memory_space<vmem>>) attributes {dimension_semantics = [#tpu.dimension_semantics<parallel>, #tpu.dimension_semantics<arbitrary>], iteration_bounds = array<i64: 1, 1>, scalar_prefetch = 0 : i64, scratch_operands = 0 : i64, tpu.core_type = #tpu.core_type<tc>, window_params = [{transform_indices = @transform_0, window_bounds = array<i64: 48, 128>}, {pipeline_mode = #tpu.pipeline_mode<synchronous>, transform_indices = @transform_1, window_bounds = array<i64: 128, 256>}, {pipeline_mode = #tpu.pipeline_mode<synchronous>, transform_indices = @transform_2, window_bounds = array<i64: 1, 256>}, {pipeline_mode = #tpu.pipeline_mode<synchronous>, transform_indices = @transform_3, window_bounds = array<i64: 128, 1>}, {pipeline_mode = #tpu.pipeline_mode<synchronous>, transform_indices = @transform_4, window_bounds = array<i64: 1, 1>}, {transform_indices = @transform_5, window_bounds = array<i64: 1, 1, 1>}, {transform_indices = @transform_6, window_bounds = array<i64: 1, 1, 1>}, {transform_indices = @transform_7, window_bounds = array<i64: 1, 1, 128>}]} {
    %c0_i32 = arith.constant 0 : i32
    %0 = arith.cmpi eq, %arg1, %c0_i32 : i32
    %1 = arith.extui %0 : i1 to i32
    %c0_i32_0 = arith.constant 0 : i32
    %2 = arith.cmpi ne, %1, %c0_i32_0 : i32
    scf.if %2 {
      %cst_24 = arith.constant -1.000000e+30 : f32
      %49 = vector.broadcast %cst_24 : f32 to vector<1x1xf32>
      %c0_25 = arith.constant 0 : index
      %c0_26 = arith.constant 0 : index
      %c0_27 = arith.constant 0 : index
      %50 = vector.load %arg7[%c0_25, %c0_26, %c0_27] : memref<1x1x1xf32, #tpu.memory_space<vmem>>, vector<1x1x1xf32>
      %51 = vector.shape_cast %50 : vector<1x1x1xf32> to vector<1x1xf32>
      %52 = vector.shape_cast %49 : vector<1x1xf32> to vector<1x1x1xf32>
      tpu.vector_store %arg7[%c0_25, %c0_26, %c0_27], %52 {strides = array<i32>} : memref<1x1x1xf32, #tpu.memory_space<vmem>>, vector<1x1x1xf32>,
      %cst_28 = arith.constant 0.000000e+00 : f32
      %53 = vector.broadcast %cst_28 : f32 to vector<1x1xf32>
      %c0_29 = arith.constant 0 : index
      %c0_30 = arith.constant 0 : index
      %c0_31 = arith.constant 0 : index
      %54 = vector.load %arg8[%c0_29, %c0_30, %c0_31] : memref<1x1x1xf32, #tpu.memory_space<vmem>>, vector<1x1x1xf32>
      %55 = vector.shape_cast %54 : vector<1x1x1xf32> to vector<1x1xf32>
      %56 = vector.shape_cast %53 : vector<1x1xf32> to vector<1x1x1xf32>
      tpu.vector_store %arg8[%c0_29, %c0_30, %c0_31], %56 {strides = array<i32>} : memref<1x1x1xf32, #tpu.memory_space<vmem>>, vector<1x1x1xf32>,
      %cst_32 = arith.constant 0.000000e+00 : f32
      %57 = vector.broadcast %cst_32 : f32 to vector<1x128xf32>
      %c0_33 = arith.constant 0 : index
      %c0_34 = arith.constant 0 : index
      %c0_35 = arith.constant 0 : index
      %58 = vector.load %arg9[%c0_33, %c0_34, %c0_35] : memref<1x1x128xf32, #tpu.memory_space<vmem>>, vector<1x1x128xf32>
      %59 = vector.shape_cast %58 : vector<1x1x128xf32> to vector<1x128xf32>
      %60 = vector.shape_cast %57 : vector<1x128xf32> to vector<1x1x128xf32>
      tpu.vector_store %arg9[%c0_33, %c0_34, %c0_35], %60 {strides = array<i32>} : memref<1x1x128xf32, #tpu.memory_space<vmem>>, vector<1x1x128xf32>,
    } else {
    }
    %c0 = arith.constant 0 : index
    %c0_1 = arith.constant 0 : index
    %3 = vector.load %arg2[%c0, %c0_1] : memref<48x128xbf16, #tpu.memory_space<vmem>>, vector<48x128xbf16>
    %c0_2 = arith.constant 0 : index
    %c0_3 = arith.constant 0 : index
    %4 = vector.load %arg3[%c0_2, %c0_3] : memref<128x256xbf16, #tpu.memory_space<vmem>>, vector<128x256xbf16>
    %cst = arith.constant dense<0.000000e+00> : vector<48x256xf32>
    %5 = tpu.matmul %3, %4, %cst {dimension_numbers = #tpu.dot_dimension_numbers<[1], [0], [0], [1], [0, 0, 1, 1], [], []>} : vector<48x128xbf16>, vector<128x256xbf16>, vector<48x256xf32> -> vector<48x256xf32>
    %c0_4 = arith.constant 0 : index
    %c0_5 = arith.constant 0 : index
    %6 = vector.load %arg4[%c0_4, %c0_5] : memref<1x256xf32, #tpu.memory_space<vmem>>, vector<1x256xf32>
    %7 = vector.broadcast %6 : vector<1x256xf32> to vector<48x256xf32>
    %8 = arith.addf %5, %7 : vector<48x256xf32>
    %9 = vector.extract_strided_slice %8 {offsets = [0, 0], sizes = [48, 128], strides = [1, 1]} : vector<48x256xf32> to vector<48x128xf32>
    %10 = math.tanh %9 : vector<48x128xf32>
    %11 = vector.extract_strided_slice %8 {offsets = [0, 128], sizes = [48, 128], strides = [1, 1]} : vector<48x256xf32> to vector<48x128xf32>
    %12 = arith.negf %11 : vector<48x128xf32>
    %13 = math.exp %12 : vector<48x128xf32>
    %cst_6 = arith.constant 1.000000e+00 : f32
    %14 = vector.broadcast %cst_6 : f32 to vector<48x128xf32>
    %15 = arith.addf %14, %13 : vector<48x128xf32>
    %16 = arith.divf %14, %15 : vector<48x128xf32>
    %17 = arith.mulf %10, %16 : vector<48x128xf32>
    %18 = arith.truncf %17 : vector<48x128xf32> to vector<48x128xbf16>
    %c0_7 = arith.constant 0 : index
    %c0_8 = arith.constant 0 : index
    %19 = vector.load %arg5[%c0_7, %c0_8] : memref<128x1xbf16, #tpu.memory_space<vmem>>, vector<128x1xbf16>
    %cst_9 = arith.constant dense<0.000000e+00> : vector<48x1xf32>
    %20 = tpu.matmul %18, %19, %cst_9 {dimension_numbers = #tpu.dot_dimension_numbers<[1], [0], [0], [1], [0, 0, 1, 1], [], []>} : vector<48x128xbf16>, vector<128x1xbf16>, vector<48x1xf32> -> vector<48x1xf32>
    %c0_10 = arith.constant 0 : index
    %c0_11 = arith.constant 0 : index
    %21 = vector.load %arg6[%c0_10, %c0_11] : memref<1x1xf32, #tpu.memory_space<vmem>>, vector<1x1xf32>
    %22 = vector.broadcast %21 : vector<1x1xf32> to vector<48x1xf32>
    %23 = arith.addf %20, %22 : vector<48x1xf32>
    %24 = tpu.transpose %23, [1, 0] : vector<48x1xf32> -> vector<1x48xf32>
    %c0_12 = arith.constant 0 : index
    %c0_13 = arith.constant 0 : index
    %c0_14 = arith.constant 0 : index
    %25 = vector.load %arg7[%c0_12, %c0_13, %c0_14] : memref<1x1x1xf32, #tpu.memory_space<vmem>>, vector<1x1x1xf32>
    %26 = vector.shape_cast %25 : vector<1x1x1xf32> to vector<1x1xf32>
    %cst_15 = arith.constant dense<0xFF800000> : vector<1xf32>
    %27 = vector.multi_reduction <maximumf>, %24, %cst_15 [1] : vector<1x48xf32> to vector<1xf32>
    %28 = vector.shape_cast %27 : vector<1xf32> to vector<1x1xf32>
    %29 = arith.maximumf %26, %28 : vector<1x1xf32>
    %30 = arith.subf %26, %29 : vector<1x1xf32>
    %31 = math.exp %30 : vector<1x1xf32>
    %32 = vector.broadcast %29 : vector<1x1xf32> to vector<1x48xf32>
    %33 = arith.subf %24, %32 : vector<1x48xf32>
    %34 = math.exp %33 : vector<1x48xf32>
    %c0_16 = arith.constant 0 : index
    %c0_17 = arith.constant 0 : index
    %c0_18 = arith.constant 0 : index
    %35 = vector.load %arg7[%c0_16, %c0_17, %c0_18] : memref<1x1x1xf32, #tpu.memory_space<vmem>>, vector<1x1x1xf32>
    %36 = vector.shape_cast %35 : vector<1x1x1xf32> to vector<1x1xf32>
    %37 = vector.shape_cast %29 : vector<1x1xf32> to vector<1x1x1xf32>
    tpu.vector_store %arg7[%c0_16, %c0_17, %c0_18], %37 {strides = array<i32>} : memref<1x1x1xf32, #tpu.memory_space<vmem>>, vector<1x1x1xf32>,
    %c1_i32 = arith.constant 1 : i32
    %38 = arith.muli %arg0, %c1_i32 : i32
    %39 = arith.addi %38, %arg1 : i32
    %c48_i32 = arith.constant 48 : i32
    %40 = arith.muli %39, %c48_i32 : i32
    %c48_i32_19 = arith.constant 48 : i32
    %41 = arith.addi %40, %c48_i32_19 : i32
    %c40_i32 = arith.constant 40 : i32
    %42 = arith.cmpi sle, %41, %c40_i32 : i32
    %43 = arith.extui %42 : i1 to i32
    %c0_i32_20 = arith.constant 0 : i32
    %44 = arith.cmpi ne, %43, %c0_i32_20 : i32
    scf.if %44 {
      %c0_24 = arith.constant 0 : index
      %c0_25 = arith.constant 0 : index
      %c0_26 = arith.constant 0 : index
      %49 = vector.load %arg8[%c0_24, %c0_25, %c0_26] : memref<1x1x1xf32, #tpu.memory_space<vmem>>, vector<1x1x1xf32>
      %50 = vector.shape_cast %49 : vector<1x1x1xf32> to vector<1x1xf32>
      %51 = arith.mulf %31, %50 : vector<1x1xf32>
      %cst_27 = arith.constant dense<0.000000e+00> : vector<1xf32>
      %52 = vector.multi_reduction <add>, %34, %cst_27 [1] : vector<1x48xf32> to vector<1xf32>
      %53 = vector.shape_cast %52 : vector<1xf32> to vector<1x1xf32>
      %54 = arith.addf %51, %53 : vector<1x1xf32>
      %c0_28 = arith.constant 0 : index
      %c0_29 = arith.constant 0 : index
      %c0_30 = arith.constant 0 : index
      %55 = vector.load %arg8[%c0_28, %c0_29, %c0_30] : memref<1x1x1xf32, #tpu.memory_space<vmem>>, vector<1x1x1xf32>
      %56 = vector.shape_cast %55 : vector<1x1x1xf32> to vector<1x1xf32>
      %57 = vector.shape_cast %54 : vector<1x1xf32> to vector<1x1x1xf32>
      tpu.vector_store %arg8[%c0_28, %c0_29, %c0_30], %57 {strides = array<i32>} : memref<1x1x1xf32, #tpu.memory_space<vmem>>, vector<1x1x1xf32>,
      %c0_31 = arith.constant 0 : index
      %c0_32 = arith.constant 0 : index
      %c0_33 = arith.constant 0 : index
      %58 = vector.load %arg9[%c0_31, %c0_32, %c0_33] : memref<1x1x128xf32, #tpu.memory_space<vmem>>, vector<1x1x128xf32>
      %59 = vector.shape_cast %58 : vector<1x1x128xf32> to vector<1x128xf32>
      %60 = vector.broadcast %31 : vector<1x1xf32> to vector<1x128xf32>
      %61 = arith.mulf %60, %59 : vector<1x128xf32>
      %62 = arith.truncf %34 : vector<1x48xf32> to vector<1x48xbf16>
      %cst_34 = arith.constant dense<0.000000e+00> : vector<1x128xf32>
      %63 = tpu.matmul %62, %3, %cst_34 {dimension_numbers = #tpu.dot_dimension_numbers<[1], [0], [0], [1], [0, 0, 1, 1], [], []>} : vector<1x48xbf16>, vector<48x128xbf16>, vector<1x128xf32> -> vector<1x128xf32>
      %64 = arith.addf %61, %63 : vector<1x128xf32>
      %c0_35 = arith.constant 0 : index
      %c0_36 = arith.constant 0 : index
      %c0_37 = arith.constant 0 : index
      %65 = vector.load %arg9[%c0_35, %c0_36, %c0_37] : memref<1x1x128xf32, #tpu.memory_space<vmem>>, vector<1x1x128xf32>
      %66 = vector.shape_cast %65 : vector<1x1x128xf32> to vector<1x128xf32>
      %67 = vector.shape_cast %64 : vector<1x128xf32> to vector<1x1x128xf32>
      tpu.vector_store %arg9[%c0_35, %c0_36, %c0_37], %67 {strides = array<i32>} : memref<1x1x128xf32, #tpu.memory_space<vmem>>, vector<1x1x128xf32>,
    } else {
    }
    %c48_i32_21 = arith.constant 48 : i32
    %45 = arith.addi %40, %c48_i32_21 : i32
    %c40_i32_22 = arith.constant 40 : i32
    %46 = arith.cmpi sgt, %45, %c40_i32_22 : i32
    %47 = arith.extui %46 : i1 to i32
    %c0_i32_23 = arith.constant 0 : i32
    %48 = arith.cmpi ne, %47, %c0_i32_23 : i32
    scf.if %48 {
      %49 = tpu.iota {dimensions = array<i32: 1>} : vector<1x48xi32>
      %50 = vector.broadcast %40 : i32 to vector<1x48xi32>
      %51 = arith.addi %49, %50 : vector<1x48xi32>
      %c40_i32_24 = arith.constant 40 : i32
      %52 = vector.broadcast %c40_i32_24 : i32 to vector<1x48xi32>
      %53 = arith.cmpi slt, %51, %52 : vector<1x48xi32>
      %cst_25 = arith.constant 0.000000e+00 : f32
      %54 = vector.broadcast %cst_25 : f32 to vector<1x48xf32>
      %55 = arith.select %53, %34, %54 : vector<1x48xi1>, vector<1x48xf32>
      %c0_26 = arith.constant 0 : index
      %c0_27 = arith.constant 0 : index
      %c0_28 = arith.constant 0 : index
      %56 = vector.load %arg8[%c0_26, %c0_27, %c0_28] : memref<1x1x1xf32, #tpu.memory_space<vmem>>, vector<1x1x1xf32>
      %57 = vector.shape_cast %56 : vector<1x1x1xf32> to vector<1x1xf32>
      %58 = arith.mulf %31, %57 : vector<1x1xf32>
      %cst_29 = arith.constant dense<0.000000e+00> : vector<1xf32>
      %59 = vector.multi_reduction <add>, %55, %cst_29 [1] : vector<1x48xf32> to vector<1xf32>
      %60 = vector.shape_cast %59 : vector<1xf32> to vector<1x1xf32>
      %61 = arith.addf %58, %60 : vector<1x1xf32>
      %c0_30 = arith.constant 0 : index
      %c0_31 = arith.constant 0 : index
      %c0_32 = arith.constant 0 : index
      %62 = vector.load %arg8[%c0_30, %c0_31, %c0_32] : memref<1x1x1xf32, #tpu.memory_space<vmem>>, vector<1x1x1xf32>
      %63 = vector.shape_cast %62 : vector<1x1x1xf32> to vector<1x1xf32>
      %64 = vector.shape_cast %61 : vector<1x1xf32> to vector<1x1x1xf32>
      tpu.vector_store %arg8[%c0_30, %c0_31, %c0_32], %64 {strides = array<i32>} : memref<1x1x1xf32, #tpu.memory_space<vmem>>, vector<1x1x1xf32>,
      %c0_33 = arith.constant 0 : index
      %c0_34 = arith.constant 0 : index
      %c0_35 = arith.constant 0 : index
      %65 = vector.load %arg9[%c0_33, %c0_34, %c0_35] : memref<1x1x128xf32, #tpu.memory_space<vmem>>, vector<1x1x128xf32>
      %66 = vector.shape_cast %65 : vector<1x1x128xf32> to vector<1x128xf32>
      %67 = vector.broadcast %31 : vector<1x1xf32> to vector<1x128xf32>
      %68 = arith.mulf %67, %66 : vector<1x128xf32>
      %69 = arith.truncf %55 : vector<1x48xf32> to vector<1x48xbf16>
      %cst_36 = arith.constant dense<0.000000e+00> : vector<1x128xf32>
      %70 = tpu.matmul %69, %3, %cst_36 {dimension_numbers = #tpu.dot_dimension_numbers<[1], [0], [0], [1], [0, 0, 1, 1], [], []>} : vector<1x48xbf16>, vector<48x128xbf16>, vector<1x128xf32> -> vector<1x128xf32>
      %71 = arith.addf %68, %70 : vector<1x128xf32>
      %c0_37 = arith.constant 0 : index
      %c0_38 = arith.constant 0 : index
      %c0_39 = arith.constant 0 : index
      %72 = vector.load %arg9[%c0_37, %c0_38, %c0_39] : memref<1x1x128xf32, #tpu.memory_space<vmem>>, vector<1x1x128xf32>
      %73 = vector.shape_cast %72 : vector<1x1x128xf32> to vector<1x128xf32>
      %74 = vector.shape_cast %71 : vector<1x128xf32> to vector<1x1x128xf32>
      tpu.vector_store %arg9[%c0_37, %c0_38, %c0_39], %74 {strides = array<i32>} : memref<1x1x128xf32, #tpu.memory_space<vmem>>, vector<1x1x128xf32>,
    } else {
    }
    return
  }
  func.func @transform_0(%arg0: i32, %arg1: i32) -> (i32, i32) {
    %c1_i32 = arith.constant 1 : i32
    %0 = arith.muli %arg0, %c1_i32 : i32
    %1 = arith.addi %0, %arg1 : i32
    %c0_i32 = arith.constant 0 : i32
    %c0_i32_0 = arith.constant 0 : i32
    return %1, %c0_i32 : i32, i32
  }
  func.func @transform_1(%arg0: i32, %arg1: i32) -> (i32, i32) {
    %c0_i32 = arith.constant 0 : i32
    %c0_i32_0 = arith.constant 0 : i32
    %c0_i32_1 = arith.constant 0 : i32
    return %c0_i32, %c0_i32_0 : i32, i32
  }
  func.func @transform_2(%arg0: i32, %arg1: i32) -> (i32, i32) {
    %c0_i32 = arith.constant 0 : i32
    %c0_i32_0 = arith.constant 0 : i32
    %c0_i32_1 = arith.constant 0 : i32
    return %c0_i32, %c0_i32_0 : i32, i32
  }
  func.func @transform_3(%arg0: i32, %arg1: i32) -> (i32, i32) {
    %c0_i32 = arith.constant 0 : i32
    %c0_i32_0 = arith.constant 0 : i32
    %c0_i32_1 = arith.constant 0 : i32
    return %c0_i32, %c0_i32_0 : i32, i32
  }
  func.func @transform_4(%arg0: i32, %arg1: i32) -> (i32, i32) {
    %c0_i32 = arith.constant 0 : i32
    %c0_i32_0 = arith.constant 0 : i32
    %c0_i32_1 = arith.constant 0 : i32
    return %c0_i32, %c0_i32_0 : i32, i32
  }
  func.func @transform_5(%arg0: i32, %arg1: i32) -> (i32, i32, i32) {
    %c0_i32 = arith.constant 0 : i32
    %c0_i32_0 = arith.constant 0 : i32
    %c0_i32_1 = arith.constant 0 : i32
    return %arg0, %c0_i32, %c0_i32_0 : i32, i32, i32
  }
  func.func @transform_6(%arg0: i32, %arg1: i32) -> (i32, i32, i32) {
    %c0_i32 = arith.constant 0 : i32
    %c0_i32_0 = arith.constant 0 : i32
    %c0_i32_1 = arith.constant 0 : i32
    return %arg0, %c0_i32, %c0_i32_0 : i32, i32, i32
  }
  func.func @transform_7(%arg0: i32, %arg1: i32) -> (i32, i32, i32) {
    %c0_i32 = arith.constant 0 : i32
    %c0_i32_0 = arith.constant 0 : i32
    %c0_i32_1 = arith.constant 0 : i32
    return %arg0, %c0_i32, %c0_i32_0 : i32, i32, i32
  }
}

</mosaic_0001>

<bundles_post_ra>
// kernel: tpu_custom_call.1
= control target key start
LH: loop header
LB: loop body
LE: loop exit
PB: predicated region body
PF: predicated region fallthrough
CT: control target
= control target key end

     0   :  { %s1095_s0 = inlined_call_operand.vmem [shape: bf16[48,128], index: 0, kind: input, shape index: {}]   ;;  %s1096_s1 = inlined_call_operand.hbm [shape: bf16[128,256], index: 1, kind: input, shape index: {}]   ;;  %s1097_s2 = inlined_call_operand.vmem [shape: f32[1,256], index: 2, kind: input, shape index: {}]   ;;  %s1098_s3 = inlined_call_operand.vmem [shape: bf16[128,1], index: 3, kind: input, shape index: {}]   ;;  %s1099_s4 = inlined_call_operand.<no memory space> [shape: f32[1,1], index: 4, kind: input, shape index: {}]   ;;  %s1100_s5 = inlined_call_operand.hbm [shape: f32[1,1,1], index: 5, kind: output, shape index: {0}]   ;;  %s1101_s6 = inlined_call_operand.hbm [shape: f32[1,1,1], index: 6, kind: output, shape index: {1}]   ;;  %s1102_s7 = inlined_call_operand.hbm [shape: f32[1,1,128], index: 7, kind: output, shape index: {2}]  }
   0x1   :  { %v13_v0 = vstv %s1099_s4 }
   0x2   :  { %14 = vst [vmem:[#allocation2] sm:$0x1] %v13_v0 }
   0x3   :  { %15 = vsyncpa [#allocation4], 0 }
   0x4   :  { %16 = vsyncpa [#allocation5], 0 }
   0x5   :  { %17 = vsyncpa [#allocation8], 0  ;;  %s32_s28 = sshll.u32 %s1096_s1, 4  ;;  %s960_s29 = smov [#allocation3]   ;;  %s33_s28 = int_to_ptr.hbm [resolvable:$true] %s32_s28 }
   0x6   :  { %s34_s30 = sshll.u32 %s960_s29, 4  ;;  %s961_s8 = smov 128   ;;  %s35_s30 = int_to_ptr.vmem [resolvable:$true] %s34_s30 }
   0x7   :  { %s962_s9 = smov 8  }
   0x8   :  { %40 = dma.hbm_to_vmem [thread:$0]  %s33_s28, 2048, %s35_s30, [#allocation4], %s961_s8, %s961_s8, %s962_s9  }
   0x9   :  { %954 = dma.done.wait [#allocation4], 2048  }
   0xa   :  { %955 = vsyncadd [#allocation4], 4294965248  ;;  %v795_v1 = vld [vmem:[#allocation3 + $0x74] sm:$0xf]  ;;  %v734_v2 = vld [vmem:[#allocation3 + $0x78] sm:$0xf0] }
   0xb   :  { %v793_v3 = vld [vmem:[#allocation3 + $0x64] sm:$0xf]  ;;  %v737_v4 = vor.u32 %v795_v1, %v734_v2  ;;  %v726_v5 = vld [vmem:[#allocation3 + $0x68] sm:$0xf0]  ;;  %v732_v6 = vld [vmem:[#allocation3 + $0x70] sm:$0xf] }
   0xc   :  { %v729_v7 = vor.u32 %v793_v3, %v726_v5  ;;  %v791_v8 = vld [vmem:[#allocation3 + $0x54] sm:$0xf]  ;;  %v796_v9 = vld [vmem:[#allocation3 + $0x74] sm:$0xf0]  ;;  %v718_v10 = vld [vmem:[#allocation3 + $0x58] sm:$0xf0] }
   0xd   :  { %224 = vmatpush.bf16.msra.mxu1 %v737_v4  ;;  %v733_v11 = vor.u32 %v796_v9, %v732_v6  ;;  %v724_v12 = vld [vmem:[#allocation3 + $0x60] sm:$0xf]  ;;  %v794_v13 = vld [vmem:[#allocation3 + $0x64] sm:$0xf0]  ;;  %v721_v15 = vor.u32 %v791_v8, %v718_v10  ;;  %v716_v16 = vld [vmem:[#allocation3 + $0x50] sm:$0xf] }
   0xe   :  { %v725_v14 = vor.u32 %v794_v13, %v724_v12  ;;  %v792_v17 = vld [vmem:[#allocation3 + $0x54] sm:$0xf0]  ;;  %v789_v18 = vld [vmem:[#allocation3 + $0x44] sm:$0xf]  ;;  %v710_v19 = vld [vmem:[#allocation3 + $0x48] sm:$0xf0] }
   0xf   :  { %200 = vmatpush.bf16.msra.mxu0 %v733_v11  ;;  %v717_v20 = vor.u32 %v792_v17, %v716_v16  ;;  %v713_v21 = vor.u32 %v789_v18, %v710_v19  ;;  %v708_v22 = vld [vmem:[#allocation3 + $0x40] sm:$0xf]  ;;  %v790_v23 = vld [vmem:[#allocation3 + $0x44] sm:$0xf0]  ;;  %v787_v24 = vld [vmem:[#allocation3 + $0x34] sm:$0xf] }
  0x10   :  { %v702_v25 = vld [vmem:[#allocation3 + $0x38] sm:$0xf0]  ;;  %v709_v26 = vor.u32 %v790_v23, %v708_v22  ;;  %v700_v28 = vld [vmem:[#allocation3 + $0x30] sm:$0xf]  ;;  %v788_v29 = vld [vmem:[#allocation3 + $0x34] sm:$0xf0] }
  0x11   :  { %225 = vmatpush.bf16.msra.mxu1 %v729_v7  ;;  %v705_v27 = vor.u32 %v787_v24, %v702_v25  ;;  %v785_v30 = vld [vmem:[#allocation3 + $0x24] sm:$0xf]  ;;  %v694_v31 = vld [vmem:[#allocation3 + $0x28] sm:$0xf0]  ;;  %v701_v32 = vor.u32 %v788_v29, %v700_v28  ;;  %v692_v34 = vld [vmem:[#allocation3 + $0x20] sm:$0xf] }
  0x12   :  { %v697_v33 = vor.u32 %v785_v30, %v694_v31  ;;  %v786_v35 = vld [vmem:[#allocation3 + $0x24] sm:$0xf0]  ;;  %v783_v36 = vld [vmem:[#allocation3 + $0x14] sm:$0xf]  ;;  %v686_v37 = vld [vmem:[#allocation3 + $0x18] sm:$0xf0] }
  0x13   :  { %201 = vmatpush.bf16.msra.mxu0 %v725_v14  ;;  %v780_v38 = vld [vmem:[%s1095_s0 + $0x10] sm:$0xff]  ;;  %v693_v39 = vor.u32 %v786_v35, %v692_v34  ;;  %v689_v40 = vor.u32 %v783_v36, %v686_v37  ;;  %v784_v42 = vld [vmem:[#allocation3 + $0x14] sm:$0xf0]  ;;  %v781_v43 = vld [vmem:[#allocation3 + $0x4] sm:$0xf]  ;;  %s615_s1 = sshll.u32 %s1100_s5, 4  ;;  %s616_s1 = int_to_ptr.hbm [resolvable:$true] %s615_s1 }
  0x14   :  { %v684_v41 = vld [vmem:[#allocation3 + $0x10] sm:$0xf]  ;;  %598 = vmatpush.bf16.msra.mxu3 %v780_v38  ;;  %v678_v44 = vld [vmem:[#allocation3 + $0x8] sm:$0xf0]  ;;  %v676_v48 = vld [vmem:[#allocation3] sm:$0xf] }
  0x15   :  { %226 = vmatpush.bf16.msra.mxu1 %v721_v15  ;;  %v779_v45 = vld [vmem:[%s1095_s0 + $0x8] sm:$0xff]  ;;  %v685_v46 = vor.u32 %v784_v42, %v684_v41  ;;  %v681_v47 = vor.u32 %v781_v43, %v678_v44  ;;  %v778_v50 = vld [vmem:[%s1095_s0] sm:$0xff]  ;;  %v804_v52 = vld [vmem:[%s1098_s3 + $0x38] sm:$0xff]  ;;  %s967_s4 = smov [#allocation7]   ;;  %s626_s13 = sshll.u32 %s1101_s6, 4  ;;  %s627_s13 = int_to_ptr.hbm [resolvable:$true] %s626_s13 }
  0x16   :  { %v782_v49 = vld [vmem:[#allocation3 + $0x4] sm:$0xf0]  ;;  %445 = vmatpush.bf16.msra.mxu2 %v804_v52  ;;  %v803_v53 = vld [vmem:[%s1098_s3 + $0x30] sm:$0xff]  ;;  %v801_v55 = vld [vmem:[%s1098_s3 + $0x20] sm:$0xff]  ;;  %s624_s10 = sshll.u32 %s967_s4, 4  ;;  %s968_s5 = smov [#allocation9]   ;;  %s625_s10 = int_to_ptr.vmem [resolvable:$true] %s624_s10 }
  0x17   :  { %202 = vmatpush.bf16.msra.mxu0 %v717_v20  ;;  %v677_v51 = vor.u32 %v782_v49, %v676_v48  ;;  %v802_v54 = vld [vmem:[%s1098_s3 + $0x28] sm:$0xff]  ;;  %v96_v56 = vld [vmem:[%s1097_s2] sm:$0x3]  ;;  %v800_v57 = vld [vmem:[%s1098_s3 + $0x18] sm:$0xff]  ;;  %s635_s14 = sshll.u32 %s968_s5, 4  ;;  %s637_s17 = sshll.u32 %s1102_s7, 4  ;;  %s636_s14 = int_to_ptr.vmem [resolvable:$true] %s635_s14  ;;  %s638_s17 = int_to_ptr.hbm [resolvable:$true] %s637_s17 }
  0x18   :  { %599 = vmatpush.bf16.msra.mxu3 %v779_v45  ;;  %v1042_v58 = vperm.slane %v96_v56, 1  ;;  %v799_v59 = vld [vmem:[%s1098_s3 + $0x10] sm:$0xff]  ;;  %v798_v62 = vld [vmem:[%s1098_s3 + $0x8] sm:$0xff]  ;;  %v797_v0 = vld [vmem:[%s1098_s3] sm:$0xff]  ;;  %v1056_v14 = vperm.slane %v96_v56, 0  ;;  %s966_s3 = smov [#allocation6]  }
  0x19   :  { %227 = vmatpush.bf16.msra.mxu1 %v713_v21  ;;  %s613_s30 = sshll.u32 %s966_s3, 4  ;;  %s614_s30 = int_to_ptr.vmem [resolvable:$true] %s613_s30 }
  0x1a   :  { %446 = vmatpush.bf16.msra.mxu2 %v803_v53 }
  0x1b   :  { %203 = vmatpush.bf16.msra.mxu0 %v709_v26 }
  0x1c   :  { %600 = vmatpush.bf16.msra.mxu3 %v778_v50 }
  0x1d   :  { %228 = vmatpush.bf16.msra.mxu1 %v705_v27 }
  0x1e   :  { %447 = vmatpush.bf16.msra.mxu2 %v802_v54 }
  0x1f   :  { %204 = vmatpush.bf16.msra.mxu0 %v701_v32 }
  0x21   :  { %229 = vmatpush.bf16.msra.mxu1 %v697_v33 }
  0x22   :  { %448 = vmatpush.bf16.msra.mxu2 %v801_v55 }
  0x23   :  { %205 = vmatpush.bf16.msra.mxu0 %v693_v39 }
  0x25   :  { %230 = vmatpush.bf16.msra.mxu1 %v689_v40 }
  0x26   :  { %449 = vmatpush.bf16.msra.mxu2 %v800_v57 }
  0x27   :  { %206 = vmatpush.bf16.msra.mxu0 %v685_v46 }
  0x29   :  { %231 = vmatpush.bf16.msra.mxu1 %v681_v47 }
  0x2a   :  { %450 = vmatpush.bf16.msra.mxu2 %v799_v59 }
  0x2b   :  { %207 = vmatpush.bf16.msra.mxu0 %v677_v51 }
  0x2c   :  { %232 = vmatmul.bf16.vlgmr.msra.gmra.mxu1 %v778_v50 }
  0x2e   :  { %208 = vmatmul.bf16.vlgmr.msra.gmra.mxu0 %v778_v50  ;;  %451 = vmatpush.bf16.msra.mxu2 %v798_v62 }
  0x32   :  { %452 = vmatpush.bf16.msra.mxu2 %v797_v0 }
  0x3c   :  { %237 = vmatmul.bf16.gmra.mxu1 %v779_v45 }
  0x3e   :  { %213 = vmatmul.bf16.gmra.mxu0 %v779_v45 }
  0x4c   :  { %242 = vmatmul.bf16.gmra.mxu1 %v780_v38 }
  0x4e   :  { %218 = vmatmul.bf16.gmra.mxu0 %v780_v38 }
  0xa9   :  { %v233_v60 = vpop.f32.mrf.mxu1 }
  0xaa   :  { %v234_v61 = vadd.f32 %v233_v60, %v1042_v58 }
  0xab   :  { %v209_v1 = vpop.f32.mrf.mxu0 }
  0xac   :  { %v738_v63 = vmul.f32 -1.442695, %v234_v61  ;;  %v210_v17 = vadd.f32 %v209_v1, %v1056_v14 }
  0xae   :  { %818 = vpow2.f32 %v738_v63 }
  0xb1   :  { %v235_v2 = vpop.f32.mrf.mxu1 }
  0xb2   :  { %v236_v3 = vadd.f32 %v235_v2, %v1042_v58 }
  0xb3   :  { %v211_v9 = vpop.f32.mrf.mxu0 }
  0xb4   :  { %v819_v4 = vpop.eup %818  ;;  %v739_v5 = vmul.f32 -1.442695, %v236_v3  ;;  %v212_v26 = vadd.f32 %v211_v9, %v1056_v14 }
  0xb5   :  { %v272_v6 = vadd.f32 1.0, %v819_v4 }
  0xb6   :  { %820 = vpow2.f32 %v739_v5 }
  0xb7   :  { %822 = vrcp.f32 %v272_v6  ;;  %v289_v29 = vand.u32 2147483648, %v272_v6  ;;  %vm283_vm1 = vweird.f32 %v272_v6  ;;  %v287_v30 = vand.u32 2147483647, %v272_v6 }
  0xb9   :  { %v238_v7 = vpop.f32.mrf.mxu1  ;;  %v290_v40 = vor.u32 1.1754944e-38, %v289_v29  ;;  %vm288_vm4 = vcmp.eq.f32.partialorder %v287_v30, 8.507059e+37 }
  0xba   :  { %v239_v8 = vadd.f32 %v238_v7, %v1042_v58 }
  0xbb   :  { %v214_v23 = vpop.f32.mrf.mxu0 }
  0xbc   :  { %v821_v10 = vpop.eup %820  ;;  %v740_v11 = vmul.f32 -1.442695, %v239_v8  ;;  %v215_v56 = vadd.f32 %v214_v23, %v1056_v14 }
  0xbd   :  { %v823_v12 = vpop.eup %822  ;;  %v273_v13 = vadd.f32 1.0, %v821_v10 }
  0xbe   :  { %824 = vpow2.f32 %v740_v11  ;;  %v279_v15 = vmul.f32 %v823_v12, %v272_v6  ;;  %vm284_vm0 = vweird.f32 %v823_v12 }
  0xbf   :  { %826 = vrcp.f32 %v273_v13  ;;  %vm1064_vm2 = vmor %vm283_vm1, %vm284_vm0  ;;  %v302_v34 = vand.u32 2147483647, %v273_v13  ;;  %v304_v35 = vand.u32 2147483648, %v273_v13  ;;  %vm298_vm5 = vweird.f32 %v273_v13 }
  0xc0   :  { %v280_v16 = vsub.f32 1.0, %v279_v15  ;;  %828 = vtanh.f32 %v210_v17 }
  0xc1   :  { %v240_v18 = vpop.f32.mrf.mxu1  ;;  %v305_v47 = vor.u32 1.1754944e-38, %v304_v35  ;;  %vm303_vm7 = vcmp.eq.f32.partialorder %v302_v34, 8.507059e+37 }
  0xc2   :  { %v241_v19 = vadd.f32 %v240_v18, %v1042_v58  ;;  %v281_v20 = vmul.f32 %v823_v12, %v280_v16 }
  0xc3   :  { %v216_v48 = vpop.f32.mrf.mxu0 }
  0xc4   :  { %v825_v21 = vpop.eup %824  ;;  %v741_v22 = vmul.f32 -1.442695, %v241_v19  ;;  %v282_v27 = vadd.f32 %v823_v12, %v281_v20  ;;  %v217_v2 = vadd.f32 %v216_v48, %v1056_v14 }
  0xc5   :  { %v827_v24 = vpop.eup %826  ;;  %v1060_v25 = vadd.f32 1.0, %v825_v21 }
  0xc6   :  { %830 = vpow2.f32 %v741_v22  ;;  %v294_v28 = vmul.f32 %v827_v24, %v273_v13  ;;  %v286_v37 = vsel %vm1064_vm2, %v823_v12, %v282_v27  ;;  %vm299_vm3 = vweird.f32 %v827_v24  ;;  %v829_v39 = vpop.eup %828 }
  0xc7   :  { %832 = vrcp.f32 %v1060_v25  ;;  %v291_v46 = vsel %vm288_vm4, %v290_v40, %v286_v37  ;;  %vm300_vm6 = vmor %vm298_vm5, %vm299_vm3  ;;  %v319_v5 = vand.u32 2147483648, %v1060_v25  ;;  %vm313_vm9 = vweird.f32 %v1060_v25 }
  0xc8   :  { %v295_v31 = vsub.f32 1.0, %v294_v28  ;;  %834 = vtanh.f32 %v212_v26  ;;  %v368_v53 = vmul.f32 %v829_v39, %v291_v46 }
  0xc9   :  { %v243_v32 = vpop.f32.mrf.mxu1  ;;  %v320_v13 = vor.u32 1.1754944e-38, %v319_v5 }
  0xca   :  { %v244_v36 = vadd.f32 %v243_v32, %v1042_v58  ;;  %v296_v38 = vmul.f32 %v827_v24, %v295_v31 }
  0xcb   :  { %v219_v6 = vpop.f32.mrf.mxu0 }
  0xcc   :  { %v831_v41 = vpop.eup %830  ;;  %v742_v42 = vmul.f32 -1.442695, %v244_v36  ;;  %v297_v43 = vadd.f32 %v827_v24, %v296_v38  ;;  %v220_v31 = vadd.f32 %v219_v6, %v1056_v14  ;;  %v964_v6 = vmov 0  }
  0xcd   :  { %v833_v44 = vpop.eup %832  ;;  %v275_v45 = vadd.f32 1.0, %v831_v41  ;;  %814 = vset.pattern.permute.xlu1 %v964_v6  ;;  %815 = vset.pattern.permute.xlu2 %v964_v6 }
  0xce   :  { %836 = vpow2.f32 %v742_v42  ;;  %v301_v49 = vsel %vm300_vm6, %v827_v24, %v297_v43  ;;  %v309_v50 = vmul.f32 %v833_v44, %v1060_v25  ;;  %v835_v51 = vpop.eup %834  ;;  %vm314_vm8 = vweird.f32 %v833_v44 }
  0xcf   :  { %838 = vrcp.f32 %v275_v45  ;;  %v306_v52 = vsel %vm303_vm7, %v305_v47, %v301_v49  ;;  %vm315_vm10 = vmor %vm313_vm9, %vm314_vm8  ;;  %v334_v8 = vand.u32 2147483648, %v275_v45  ;;  %v332_v11 = vand.u32 2147483647, %v275_v45 }
  0xd0   :  { %v369_v54 = vmul.f32 %v835_v51, %v306_v52  ;;  %v310_v55 = vsub.f32 1.0, %v309_v50  ;;  %840 = vtanh.f32 %v215_v56  ;;  %vm328_vm13 = vweird.f32 %v275_v45 }
  0xd1   :  { %v245_v57 = vpop.f32.mrf.mxu1  ;;  %v335_v20 = vor.u32 1.1754944e-38, %v334_v8  ;;  %vm333_vm15 = vcmp.eq.f32.partialorder %v332_v11, 8.507059e+37  ;;  %vm70_vm8 = vcmask 0   ;;  %vm502_vm9 = vcmask 385024  }
  0xd2   :  { %v246_v59 = vadd.f32 %v245_v57, %v1042_v58  ;;  %v374_v60 = vpack.c.bf16 %v369_v54, %v368_v53  ;;  %v311_v61 = vmul.f32 %v833_v44, %v310_v55  ;;  %v317_v58 = vand.u32 2147483647, %v1060_v25  ;;  %v817_v53 = vld [vmem:[#allocation2] ss:$0 sm:$0xff] }
  0xd3   :  { %v221_v28 = vpop.f32.mrf.mxu0 }
  0xd4   :  { %v837_v62 = vpop.eup %836  ;;  %v743_v63 = vmul.f32 -1.442695, %v246_v59  ;;  %453 = vmatmul.bf16.vlgmr.msra.gmra.mxu2 %v374_v60  ;;  %v312_v3 = vadd.f32 %v833_v44, %v311_v61  ;;  %vm318_vm12 = vcmp.eq.f32.partialorder %v317_v58, 8.507059e+37  ;;  %v222_v33 = vadd.f32 %v221_v28, %v1056_v14 }
  0xd5   :  { %v839_v0 = vpop.eup %838  ;;  %v276_v1 = vadd.f32 1.0, %v837_v62  ;;  %v965_v58 = vmov 0.0  }
  0xd6   :  { %842 = vpow2.f32 %v743_v63  ;;  %v324_v4 = vmul.f32 %v839_v0, %v275_v45  ;;  %v316_v9 = vsel %vm315_vm10, %v833_v44, %v312_v3  ;;  %vm329_vm11 = vweird.f32 %v839_v0  ;;  %v841_v12 = vpop.eup %840  ;;  %72 = vst.msk [vmem:[#allocation7] sm:$0x1] %vm70_vm8, %v965_v58 }
  0xd7   :  { %844 = vrcp.f32 %v276_v1  ;;  %v321_v19 = vsel %vm318_vm12, %v320_v13, %v316_v9  ;;  %vm330_vm14 = vmor %vm328_vm13, %vm329_vm11  ;;  %v349_v36 = vand.u32 2147483648, %v276_v1  ;;  %vm343_vm1 = vweird.f32 %v276_v1  ;;  %73 = vst [vmem:[#allocation9] sm:$0x1] %v965_v58 }
  0xd8   :  { %v325_v7 = vsub.f32 1.0, %v324_v4  ;;  %846 = vtanh.f32 %v217_v2  ;;  %v370_v25 = vmul.f32 %v841_v12, %v321_v19  ;;  %v347_v37 = vand.u32 2147483647, %v276_v1 }
  0xd9   :  { %v350_v43 = vor.u32 1.1754944e-38, %v349_v36  ;;  %v963_v3 = vmov -1e+30   ;;  %vm589_vm11 = vcmask 392192  }
  0xda   :  { %v326_v10 = vmul.f32 %v839_v0, %v325_v7  ;;  %vm348_vm4 = vcmp.eq.f32.partialorder %v347_v37, 8.507059e+37  ;;  %71 = vst.msk [vmem:[#allocation6] sm:$0x1] %vm70_vm8, %v963_v3 }
  0xdc   :  { %v843_v15 = vpop.eup %842  ;;  %v327_v16 = vadd.f32 %v839_v0, %v326_v10 }
  0xdd   :  { %v845_v17 = vpop.eup %844  ;;  %v277_v18 = vadd.f32 1.0, %v843_v15 }
  0xde   :  { %v331_v21 = vsel %vm330_vm14, %v839_v0, %v327_v16  ;;  %v339_v22 = vmul.f32 %v845_v17, %v276_v1  ;;  %v847_v23 = vpop.eup %846  ;;  %vm344_vm0 = vweird.f32 %v845_v17 }
  0xdf   :  { %848 = vrcp.f32 %v277_v18  ;;  %v336_v24 = vsel %vm333_vm15, %v335_v20, %v331_v21  ;;  %vm345_vm2 = vmor %vm343_vm1, %vm344_vm0  ;;  %v364_v39 = vand.u32 2147483648, %v277_v18  ;;  %v362_v42 = vand.u32 2147483647, %v277_v18 }
  0xe0   :  { %v371_v26 = vmul.f32 %v847_v23, %v336_v24  ;;  %v340_v27 = vsub.f32 1.0, %v339_v22  ;;  %850 = vtanh.f32 %v220_v31  ;;  %vm358_vm5 = vweird.f32 %v277_v18 }
  0xe1   :  { %852 = vtanh.f32 %v222_v33  ;;  %v365_v46 = vor.u32 1.1754944e-38, %v364_v39  ;;  %vm363_vm7 = vcmp.eq.f32.partialorder %v362_v42, 8.507059e+37  ;;  %v501_v7 = vld [vmem:[#allocation6] sm:$0x1] }
  0xe2   :  { %v375_v29 = vpack.c.bf16 %v371_v26, %v370_v25  ;;  %v341_v30 = vmul.f32 %v845_v17, %v340_v27  ;;  %v573_v25 = vld [vmem:[#allocation7] sm:$0x1] }
  0xe4   :  { %458 = vmatmul.bf16.gmra.mxu2 %v375_v29  ;;  %v342_v34 = vadd.f32 %v845_v17, %v341_v30  ;;  %v580_v30 = vld [vmem:[#allocation9] sm:$0x1] }
  0xe5   :  { %v849_v32 = vpop.eup %848 }
  0xe6   :  { %v354_v35 = vmul.f32 %v849_v32, %v277_v18  ;;  %v346_v40 = vsel %vm345_vm2, %v845_v17, %v342_v34  ;;  %vm359_vm3 = vweird.f32 %v849_v32  ;;  %v851_v14 = vpop.eup %850  ;;  %v567_v17 = vlaneseq }
  0xe7   :  { %v351_v45 = vsel %vm348_vm4, %v350_v43, %v346_v40  ;;  %vm360_vm6 = vmor %vm358_vm5, %vm359_vm3  ;;  %v853_v48 = vpop.eup %852 }
  0xe8   :  { %v355_v38 = vsub.f32 1.0, %v354_v35  ;;  %v372_v50 = vmul.f32 %v851_v14, %v351_v45  ;;  %v568_v19 = vand.u32 127, %v567_v17 }
  0xea   :  { %v356_v41 = vmul.f32 %v849_v32, %v355_v38  ;;  %vm571_vm10 = vcmp.lt.s32.totalorder %v568_v19, 40 }
  0xec   :  { %v357_v44 = vadd.f32 %v849_v32, %v356_v41 }
  0xee   :  { %v361_v47 = vsel %vm360_vm6, %v849_v32, %v357_v44 }
  0xef   :  { %v366_v49 = vsel %vm363_vm7, %v365_v46, %v361_v47 }
  0xf0   :  { %v373_v51 = vmul.f32 %v853_v48, %v366_v49 }
  0xf2   :  { %v376_v52 = vpack.c.bf16 %v373_v51, %v372_v50 }
  0xf4   :  { %463 = vmatmul.bf16.gmra.mxu2 %v376_v52 }
 0x157   :  { %v454_v54 = vpop.f32.mrf.mxu2 }
 0x158   :  { %v455_v55 = vadd.f32 %v817_v53, %v454_v54 }
 0x15a   :  { %469 = vxpose.xlu0.b32.start [1/6] (short) (narrow) %v455_v55, 8 }
 0x15f   :  { %v456_v56 = vpop.f32.mrf.mxu2 }
 0x160   :  { %v457_v57 = vadd.f32 %v817_v53, %v456_v56 }
 0x162   :  { %470 = vxpose.xlu0.b32.cont [2/6] (short) (narrow) %v457_v57, 8 }
 0x167   :  { %v459_v59 = vpop.f32.mrf.mxu2 }
 0x168   :  { %v460_v60 = vadd.f32 %v817_v53, %v459_v59 }
 0x16a   :  { %471 = vxpose.xlu0.b32.cont [3/6] (short) (narrow) %v460_v60, 8 }
 0x16f   :  { %v461_v61 = vpop.f32.mrf.mxu2 }
 0x170   :  { %v462_v62 = vadd.f32 %v817_v53, %v461_v61 }
 0x172   :  { %472 = vxpose.xlu0.b32.cont [4/6] (short) (narrow) %v462_v62, 8 }
 0x177   :  { %v464_v63 = vpop.f32.mrf.mxu2 }
 0x178   :  { %v465_v0 = vadd.f32 %v817_v53, %v464_v63 }
 0x17a   :  { %473 = vxpose.xlu0.b32.cont [5/6] (short) (narrow) %v465_v0, 8 }
 0x17f   :  { %v466_v1 = vpop.f32.mrf.mxu2 }
 0x180   :  { %v467_v2 = vadd.f32 %v817_v53, %v466_v1 }
 0x182   :  { %474 = vxpose.xlu0.b32.end [6/6] (short) (narrow) %v467_v2, 8 }
 0x1e9   :  { %816 = vset.pattern.permute.xlu0 %v964_v6 }
 0x1fe   :  { %v485_v4 = vpop.trf.xlu0 }
 0x1ff   :  { %v503_v5 = vsel %vm502_vm9, %v485_v4, -inf }
 0x200   :  { %504 = vmax.xlane.f32.xlu1 %v503_v5 }
 0x273   :  { %v505_v8 = vpop.xlane.xlu1 %504 }
 0x274   :  { %v506_v9 = vmax.f32 %v501_v7, %v505_v8 }
 0x276   :  { %v507_v10 = vsub.f32 %v501_v7, %v506_v9  ;;  %520 = vst.msk [vmem:[#allocation6] sm:$0x1] %vm70_vm8, %v506_v9  ;;  %512 = vperm.xlu1 %814, %v506_v9  }
 0x277   :  { %618 = dma.vmem_to_hbm [thread:$0]  %s614_s30, 16, %s616_s1, [#allocation5]  }
 0x278   :  { %v508_v11 = vmul.f32 1.442695, %v507_v10 }
 0x27a   :  { %854 = vpow2.f32 %v508_v11 }
 0x280   :  { %v855_v12 = vpop.eup %854 }
 0x281   :  { %583 = vperm.xlu2 %815, %v855_v12   ;;  %v574_v26 = vmul.f32 %v855_v12, %v573_v25 }
 0x2db   :  { %v584_v24 = vpop.permute.xlu2 %583 }
 0x2dc   :  { %v586_v29 = vperm.slane %v584_v24, 0 }
 0x2de   :  { %v587_v31 = vmul.f32 %v586_v29, %v580_v30 }
 0x2e8   :  { %v513_v13 = vpop.permute.xlu1 %512 }
 0x2e9   :  { %v515_v15 = vperm.slane %v513_v13, 0 }
 0x2eb   :  { %v516_v16 = vsub.f32 %v485_v4, %v515_v15 }
 0x2ed   :  { %v517_v18 = vmul.f32 1.442695, %v516_v16 }
 0x2ef   :  { %856 = vpow2.f32 %v517_v18 }
 0x2f5   :  { %v857_v20 = vpop.eup %856 }
 0x2f6   :  { %v572_v21 = vsel %vm571_vm10, %v857_v20, 0.0 }
 0x2f7   :  { %v575_v22 = vsel %vm502_vm9, %v572_v21, 0.0  ;;  %v588_v23 = vpack.c.bf16 %v572_v21, %v572_v21 }
 0x2f8   :  { %576 = vadd.xlane.f32.xlu2 %v575_v22 }
 0x2f9   :  { %777 = vmatmul.msk.bf16.vlgmr.msra.gmra.mxu3 %vm589_vm11, %v588_v23 }
 0x36b   :  { %v577_v27 = vpop.xlane.xlu2 %576 }
 0x36c   :  { %v578_v28 = vadd.f32 %v577_v27, %v574_v26 }
 0x36e   :  { %579 = vst.msk [vmem:[#allocation7] sm:$0x1] %vm70_vm8, %v578_v28 }
 0x36f   :  { %629 = dma.vmem_to_hbm [thread:$0]  %s625_s10, 16, %s627_s13, [#allocation8]  }
 0x37c   :  { %v602_v32 = vpop.f32.mrf.mxu3 }
 0x37d   :  { %v606_v33 = vadd.f32 %v602_v32, %v587_v31 }
 0x37f   :  { %607 = vst [vmem:[#allocation9] sm:$0x1] %v606_v33 }
 0x380   :  { %640 = dma.vmem_to_hbm [thread:$0]  %s636_s14, 16, %s638_s17, [#allocation8]  }
 0x384   :  { %v604_v34 = vpop.f32.mrf.mxu3 }
 0x385   :  { %956 = dma.done.wait [#allocation5], 16  }
 0x386   :  { %957 = vsyncadd [#allocation5], 4294967280 }
 0x387   :  { %958 = dma.done.wait [#allocation8], 32  }
 0x388   :  { %959 = vsyncadd [#allocation8], 4294967264 }
 0x389   :  { %653 = vsyncpa [#allocation4], 1 }
 0x38a   :  { %654 = vsyncpa [#allocation5], 1 }
 0x38b   :  { %655 = vsyncpa [#allocation8], 1 }

</bundles_post_ra>
